<compile_context>
chip_gen: v5e
topology: v5e:2x2
jax: 0.10.0
libtpu: 0.0.40
codegen_flags: <defaults>
</compile_context>

<pallas_src>
import jax
import jax.numpy as jnp
from jax.experimental import pallas as pl
from jax.experimental.pallas import tpu as pltpu


# --------------------------------------------------------------------------------------
# helpers
# --------------------------------------------------------------------------------------
def _cdiv(a, b):
    return -(-a // b)


def _round_up(a, m):
    return _cdiv(a, m) * m


def _sublane(esize):
    # sublane packing: f32 -> 8, bf16/f16 -> 16, int8/fp8 -> 32
    return {4: 8, 2: 16, 1: 32}.get(esize, 8)


def _vmem_sizing():
    """Per-generation VMEM (budget, limit): v5e/v6e have 128 MiB, v7x 64 MiB per core."""
    try:
        cap = int(pltpu.get_tpu_info().vmem_capacity_bytes)
    except Exception:
        cap = 64 << 20  # conservative default (v7x per-core VMEM)
    budget = (cap * 3) // 4      # ~96 MiB on 128 MiB parts, ~48 MiB on v7x
    limit = (cap * 7) // 8       # ~112 MiB / ~56 MiB
    return budget, limit


def _pick_rows_per_step(total_rows, cap_rows, sublane):
    """Rows per grid step: sublane-aligned, several (preferably even) steps, <= VMEM cap."""
    if total_rows <= sublane:
        return total_rows                       # tiny axis: one full block (block == dim)
    cap_rows = max(sublane, (int(cap_rows) // sublane) * sublane)
    # target ~4 pipeline steps even when everything would fit a single step
    tr = min(cap_rows, max(sublane, _round_up(_cdiv(total_rows, 4), sublane)))
    if _cdiv(total_rows, tr) < 2:
        # never a single un-overlapped step (also idles one v7x TensorCore)
        tr = max(sublane, _round_up(_cdiv(total_rows, 2), sublane))
    steps = _cdiv(total_rows, tr)
    if steps > 1 and steps % 2 == 1:
        # prefer an even step count so the "parallel" axis splits across v7x's 2 TCs
        alt = max(sublane, _round_up(_cdiv(total_rows, steps + 1), sublane))
        if alt <= cap_rows and _cdiv(total_rows, alt) % 2 == 0:
            tr = alt
    return tr


# --------------------------------------------------------------------------------------
# kernels
# --------------------------------------------------------------------------------------
def _upsample_fused_kernel(x_ref, r_ref, o_ref):
    # x_ref: (TR, G*W)   r_ref: (G*W, G*sh*W*sw)   o_ref: (TR, G*sh*W*sw)
    o_ref[...] = jnp.dot(
        x_ref[...].astype(r_ref.dtype),
        r_ref[...],
        preferred_element_type=jnp.float32,
    ).astype(o_ref.dtype)


def _upsample_separable_kernel(x_ref, rw_ref, o_ref):
    # x_ref: (TR, W)   rw_ref: (W, W*sw)   o_ref: (TR, sh, W*sw)
    z = jnp.dot(
        x_ref[...].astype(rw_ref.dtype),
        rw_ref[...],
        preferred_element_type=jnp.float32,
    )
    tr, sh, wo = o_ref.shape
    o_ref[...] = jnp.broadcast_to(z[:, None, :], (tr, sh, wo)).astype(o_ref.dtype)


# --------------------------------------------------------------------------------------
# constant replication matrices
# --------------------------------------------------------------------------------------
def _fused_replication_matrix(G, W, sh, sw, dtype):
    """0/1 matrix R with (flattened G-row input group) @ R = (flattened upsampled group)."""
    Wo = W * sw
    j = jnp.arange(G * sh * Wo, dtype=jnp.int32)
    out_r = j // Wo                        # output row within the group
    out_c = j % Wo                         # output column
    src = (out_r // sh) * W + out_c // sw  # flat source index within the group
    i = jnp.arange(G * W, dtype=jnp.int32)
    return (i[:, None] == src[None, :]).astype(dtype)


def _width_replication_matrix(W, sw, dtype):
    j = jnp.arange(W * sw, dtype=jnp.int32)
    i = jnp.arange(W, dtype=jnp.int32)
    return (i[:, None] == (j // sw)[None, :]).astype(dtype)


# --------------------------------------------------------------------------------------
# public wrapper (forward of the PyTorch `Upsample` module, mode='nearest')
# --------------------------------------------------------------------------------------
def upsample_nearest(x, scale_factor=2, size=None):
    """Nearest-neighbor upsample of an NCHW tensor by integer (per-axis) scale factors."""
    B, C, H, W = x.shape

    if size is not None:
        Ho_t, Wo_t = (size, size) if not isinstance(size, (tuple, list)) else tuple(size)
        if Ho_t % H or Wo_t % W:
            # TODO(synk): non-integer-ratio `size=` (PyTorch index-based nearest) not implemented.
            raise ValueError("size must be an integer multiple of the input spatial dims")
        sh, sw = Ho_t // H, Wo_t // W
    else:
        if isinstance(scale_factor, (tuple, list)):
            if len(scale_factor) != 2:
                raise ValueError("scale_factor tuple must have 2 entries for NCHW input")
            sh_f, sw_f = scale_factor
        else:
            sh_f = sw_f = scale_factor
        if (float(sh_f) != int(sh_f) or float(sw_f) != int(sw_f)
                or int(sh_f) < 1 or int(sw_f) < 1):
            # TODO(synk): fractional scale factors (PyTorch's index-based nearest) not implemented.
            raise ValueError(f"only positive integer scale factors supported, got {scale_factor!r}")
        sh, sw = int(sh_f), int(sw_f)

    Ho, Wo = H * sh, W * sw
    if sh == 1 and sw == 1:
        return x

    dt = x.dtype
    esize = jnp.dtype(dt).itemsize
    # TODO(synk): replication runs through an MXU matmul: a non-finite input value poisons its
    # whole fused row-group, and integer inputs with |v| >= 2**24 lose exactness via float32.
    r_dtype = dt if jnp.issubdtype(dt, jnp.floating) else jnp.float32
    r_esize = jnp.dtype(r_dtype).itemsize
    sublane = _sublane(esize)
    vmem_budget, vmem_limit = _vmem_sizing()

    # ---- pick path / fused row-group size G --------------------------------------------
    R_CAP = 8 << 20
    r_bytes_of = lambda g: (g * W) * (g * sh * Wo) * r_esize
    divisors = [g for g in range(1, H + 1) if H % g == 0]
    fit = [g for g in divisors if r_bytes_of(g) <= R_CAP]
    G = None
    if fit:
        aligned = [g for g in fit if (g * W) % 128 == 0]
        wide = [g for g in fit if g * W >= 256]
        # Smallest lane-aligned group -> minimal MXU FLOPs and R bytes; else the smallest
        # group spanning >=2 full lane tiles; else (tiny planes) the widest fitting group.
        G = aligned[0] if aligned else (wide[0] if wide else fit[-1])
    use_separable = (G is None) or (W >= 256)

    if not use_separable:
        # ---- Path A: fused G-row groups; one matmul does both H and W replication ------
        in_cols, out_cols = G * W, G * sh * Wo
        BCR = B * C * (H // G)                 # fused batch * channel * row-group axis
        x2 = x.reshape(BCR, in_cols)           # contiguous view, free
        r_mat = _fused_replication_matrix(G, W, sh, sw, r_dtype)
        r_bytes = in_cols * out_cols * r_esize

        per_row = 2 * (in_cols + out_cols) * esize      # double-buffered in/out blocks
        if r_dtype != dt:
            per_row += in_cols * r_esize                # x.astype(r_dtype) temp
        per_row += out_cols * 4                         # f32 matmul accumulator
        cap_rows = (vmem_budget - r_bytes) // per_row   # R charged once (Buffered(1))
        tr = _pick_rows_per_step(BCR, cap_rows, sublane)
        grid = (_cdiv(BCR, tr),)

        cost = pl.CostEstimate(
            flops=2 * BCR * in_cols * out_cols,
            transcendentals=0,
            bytes_accessed=int(BCR * (in_cols + out_cols) * esize + r_bytes),
        )

        y2 = pl.pallas_call(
            _upsample_fused_kernel,
            out_shape=jax.ShapeDtypeStruct((BCR, out_cols), dt),
            grid_spec=pltpu.PrefetchScalarGridSpec(
                num_scalar_prefetch=0,
                grid=grid,
                in_specs=[
                    pl.BlockSpec((tr, in_cols), lambda i: (i, 0)),
                    # resident replication matrix: constant block, single pipeline buffer
                    pl.BlockSpec((in_cols, out_cols), lambda i: (0, 0),
                                 pipeline_mode=pl.Buffered(1)),
                ],
                out_specs=pl.BlockSpec((tr, out_cols), lambda i: (i, 0)),
            ),
            compiler_params=pltpu.CompilerParams(
                dimension_semantics=("parallel",),
                vmem_limit_bytes=int(vmem_limit),
            ),
            cost_estimate=cost,
        )(x2, r_mat)
        return y2.reshape(B, C, Ho, Wo)

    # ---- Path B: separable width matmul + sublane height broadcast (large W) -----------
    BCH = B * C * H
    x2 = x.reshape(BCH, W)
    rw = _width_replication_matrix(W, sw, r_dtype)
    rw_bytes = W * Wo * r_esize
    # TODO(synk): for extreme W where Rw itself exceeds VMEM, tile Rw's columns (all of its
    # diagonal blocks are identical) instead of keeping the whole (W, W*sw) matrix resident.

    per_row = 2 * (W + sh * Wo) * esize                 # double-buffered in/out blocks
    if r_dtype != dt:
        per_row += W * r_esize                          # x.astype temp
    per_row += (1 + sh) * Wo * 4                        # f32 z + broadcast temp
    cap_rows = (vmem_budget - rw_bytes) // per_row
    tr = _pick_rows_per_step(BCH, cap_rows, sublane)
    grid = (_cdiv(BCH, tr),)

    cost = pl.CostEstimate(
        flops=2 * BCH * W * Wo,
        transcendentals=0,
        bytes_accessed=int(BCH * (W + sh * Wo) * esize + rw_bytes),
    )

    y3 = pl.pallas_call(
        _upsample_separable_kernel,
        out_shape=jax.ShapeDtypeStruct((BCH, sh, Wo), dt),
        grid_spec=pltpu.PrefetchScalarGridSpec(
            num_scalar_prefetch=0,
            grid=grid,
            in_specs=[
                pl.BlockSpec((tr, W), lambda i: (i, 0)),
                pl.BlockSpec((W, Wo), lambda i: (0, 0), pipeline_mode=pl.Buffered(1)),
            ],
            out_specs=pl.BlockSpec((tr, sh, Wo), lambda i: (i, 0, 0)),
        ),
        compiler_params=pltpu.CompilerParams(
            dimension_semantics=("parallel",),
            vmem_limit_bytes=int(vmem_limit),
        ),
        cost_estimate=cost,
    )(x2, rw)
    return y3.reshape(B, C, Ho, Wo)


# --------------------------------------------------------------------------------------
# reference + self-test
# --------------------------------------------------------------------------------------
def _reference_upsample_nearest(x, scale_factor=2):
    if isinstance(scale_factor, (tuple, list)):
        sh, sw = (int(s) for s in scale_factor)
    else:
        sh = sw = int(scale_factor)
    return jnp.repeat(jnp.repeat(x, sh, axis=2), sw, axis=3)


if __name__ == "__main__":
    key = jax.random.PRNGKey(0)
    B, C, H, W = 2, 4, 16, 16
    x = jax.random.normal(key, (B, C, H, W), dtype=jnp.float32)

    y = upsample_nearest(x, scale_factor=2)
    y = jax.block_until_ready(y)

    y_ref = _reference_upsample_nearest(x, scale_factor=2)
    assert y.shape == (B, C, 2 * H, 2 * W), y.shape
    assert jnp.allclose(y, y_ref), "mismatch vs reference nearest upsample"

    print("KERNEL_OK")
</pallas_src>

<mosaic_0001>
module attributes {stable_mosaic.version = 11 : i64} {
  func.func @_upsample_fused_kernel(%arg0: i32, %arg1: memref<8x128xf32, #tpu.memory_space<vmem>>, %arg2: memref<128x512xf32, #tpu.memory_space<vmem>>, %arg3: memref<8x512xf32, #tpu.memory_space<vmem>>) attributes {dimension_semantics = [#tpu.dimension_semantics<parallel>], iteration_bounds = array<i64: 2>, scalar_prefetch = 0 : i64, scratch_operands = 0 : i64, tpu.core_type = #tpu.core_type<tc>, window_params = [{transform_indices = @transform_0, window_bounds = array<i64: 8, 128>}, {pipeline_mode = #tpu.pipeline_mode<synchronous>, transform_indices = @transform_1, window_bounds = array<i64: 128, 512>}, {transform_indices = @transform_2, window_bounds = array<i64: 8, 512>}]} {
    %c0 = arith.constant 0 : index
    %c0_0 = arith.constant 0 : index
    %0 = vector.load %arg1[%c0, %c0_0] : memref<8x128xf32, #tpu.memory_space<vmem>>, vector<8x128xf32>
    %c0_1 = arith.constant 0 : index
    %c0_2 = arith.constant 0 : index
    %1 = vector.load %arg2[%c0_1, %c0_2] : memref<128x512xf32, #tpu.memory_space<vmem>>, vector<128x512xf32>
    %cst = arith.constant dense<0.000000e+00> : vector<8x512xf32>
    %2 = tpu.matmul %0, %1, %cst {dimension_numbers = #tpu.dot_dimension_numbers<[1], [0], [0], [1], [0, 0, 1, 1], [], []>} : vector<8x128xf32>, vector<128x512xf32>, vector<8x512xf32> -> vector<8x512xf32>
    %c0_3 = arith.constant 0 : index
    %c0_4 = arith.constant 0 : index
    %3 = vector.load %arg3[%c0_3, %c0_4] : memref<8x512xf32, #tpu.memory_space<vmem>>, vector<8x512xf32>
    tpu.vector_store %arg3[%c0_3, %c0_4], %2 {strides = array<i32>} : memref<8x512xf32, #tpu.memory_space<vmem>>, vector<8x512xf32>,
    return
  }
  func.func @transform_0(%arg0: i32) -> (i32, i32) {
    %c0_i32 = arith.constant 0 : i32
    %c0_i32_0 = arith.constant 0 : i32
    return %arg0, %c0_i32 : i32, i32
  }
  func.func @transform_1(%arg0: i32) -> (i32, i32) {
    %c0_i32 = arith.constant 0 : i32
    %c0_i32_0 = arith.constant 0 : i32
    %c0_i32_1 = arith.constant 0 : i32
    return %c0_i32, %c0_i32_0 : i32, i32
  }
  func.func @transform_2(%arg0: i32) -> (i32, i32) {
    %c0_i32 = arith.constant 0 : i32
    %c0_i32_0 = arith.constant 0 : i32
    return %arg0, %c0_i32 : i32, i32
  }
}

</mosaic_0001>

<bundles_post_ra>
// kernel: tpu_custom_call.1
= control target key start
LH: loop header
LB: loop body
LE: loop exit
PB: predicated region body
PF: predicated region fallthrough
CT: control target
= control target key end

     0   :  { %7 = vsyncpa [#allocation3], 0  ;;  %s789_s0 = inlined_call_operand.hbm [shape: f32[16,128], index: 0, kind: input, shape index: {}]   ;;  %s790_s1 = inlined_call_operand.hbm [shape: f32[128,512], index: 1, kind: input, shape index: {}]   ;;  %s791_s2 = inlined_call_operand.hbm [shape: f32[16,512], index: 2, kind: output, shape index: {}]  }
   0x1   :  { %9 = vsyncpa [#allocation3 + $0x1], 0 }
   0x2   :  { %10 = vsyncpa [#allocation6], 0 }
   0x3   :  { %11 = vsyncpa [#allocation4], 0 }
   0x4   :  { %13 = vsyncpa [#allocation4 + $0x1], 0  ;;  %s649_s9 = smov 0   ;;  %s651_s10 = smov 0  }
   0x5   :  { %s653_s11 = smov 0   ;;  %s655_s12 = smov 0  }
   0x6 LB: > { %s108_s15 = sshll.u32 %s790_s1, 4  ;;  %s673_s16 = sadd.s32 4294967295, %s629_s12   ;;  %s629_s12 = sphi %s655_s12, %s801_s12   ;;  %s625_s11 = sphi %s653_s11, %s800_s11   ;;  %s621_s10 = sphi %s651_s10, %s799_s10   ;;  %s617_s9 = sphi %s649_s9, %s798_s9   ;;  %s109_s15 = int_to_ptr.hbm [resolvable:$true] %s108_s15 }
   0x7   : > { %p425_p0 = scmp.ge.s32.totalorder %s629_s12, 1  ;;  %p40_p1 = scmp.eq.s32.totalorder %s673_s16, 0 }
   0x8   : > { %p97_p2 = scmp.lt.s32.totalorder %s629_s12, 3  ;;  %s631_s18 = smov [#allocation5]  }
   0x9   : > { %s110_s19 = sshll.u32 %s631_s18, 4  ;;  %s632_s20 = smov 512   ;;  %s111_s19 = int_to_ptr.vmem [resolvable:$true] %s110_s19 }
   0xa   : > { %p678_p3 = pnand %p425_p0, %p97_p2  ;;  %s633_s21 = smov 32  }
   0xb   : > { %s424_s22 = sadd.s32 4294967294, %s629_s12   ;;  %s689_s23 = sadd.s32 1, %s629_s12  }
   0xc   : > { %p448_p4 = pneg %p678_p3  ;;  %s26_s24 = sadd.s32 1, %s625_s11 }
   0xd   : > { %s23_s25 = ssub.s32 %s629_s12, %s689_s23  ;;  %p33_p7 = scmp.ne.s32.totalorder %s625_s11, %s621_s10 }
   0xe   : > { %p449_p6 = pnand %p448_p4, %p40_p1  ;;  %p24_p8 = scmp.eq.s32.totalorder %s23_s25, 0 }
   0xf   : > { %p34_p9 = scmp.eq.s32.totalorder %s629_s12, 0  ;;  %p39_p10 = scmp.ne.s32.totalorder %s621_s10, %s617_s9 }
  0x10   : > { %451 = dma.hbm_to_vmem [thread:$0]  (!%p449_p6), %s109_s15, 8192, %s111_s19, [#allocation6], %s632_s20, %s632_s20, %s633_s21  }
  0x11   : > { %p84_p11 = scmp.eq.s32.totalorder %s673_s16, 1  ;;  %p705_p12 = por %p40_p1, %p39_p10 }
  0x12   : > { %s701_s26 = scalar_select %p24_p8, %s625_s11, %s26_s24  }
  0x13   : > { %p709_p13 = por %p84_p11, %p33_p7  ;;  %p90_p0 = scmp.eq.s32.totalorder %s424_s22, 1 }
  0x14   : > { %p35_p2 = por %p34_p9, %p33_p7  ;;  %s124_s29 = sand.u32 1, %s625_s11  }
  0x15   : > { %p714_p4 = por %p90_p0, %p39_p10  ;;  %p461_p6 = scmp.lt.s32.totalorder %s629_s12, 2 }
  0x16   : > { %s428_s3 = sshll.u32 %s124_s29, 3  ;;  %s429_s4 = sshll.u32 %s629_s12, 3 }
  0x17   : > { %s132_s7 = scalar_lea.hbm %s789_s0, %s429_s4  ;;  %s128_s13 = scalar_lea.vmem [#allocation2], %s428_s3 }
  0x18   : > { %s134_s8 = sshll.u32 %s132_s7, 4  ;;  %s136_s14 = sshll.u32 %s128_s13, 4  ;;  %s135_s8 = int_to_ptr.hbm [resolvable:$true] %s134_s8  ;;  %s137_s14 = int_to_ptr.vmem [resolvable:$true] %s136_s14 }
  0x19   : > { %p723_p8 = pnand %p461_p6, %p35_p2  ;;  %s125_s18 = scalar_lea.sflag [#allocation3], %s124_s29 }
  0x1a   : > { %s529_s19 = sshra.s32 %s135_s8, 4  ;;  %s536_s24 = scalar_lea.hbm %s789_s0, 16  ;;  %s530_s19 = int_to_ptr.hbm [resolvable:$true] %s529_s19 }
  0x1b   : > { %s531_s20 = scalar_lea.hbm %s530_s19, 8  ;;  %p533_p9 = pneg %p723_p8 }
  0x1c   : > { %p532_p7 = scmp.ne.s32.totalorder %s530_s19, %s531_s20  ;;  %p537_p0 = scmp.lt.s32.totalorder %s530_s19, %s789_s0 }
  0x1d   : > { %p538_p2 = scmp.lt.s32.totalorder %s536_s24, %s531_s20 }
  0x1e   : > { %p534_p10 = pnand %p533_p9, %p532_p7 }
  0x1f   : > { %p539_p6 = por %p538_p2, %p537_p0 }
  0x20   : > { %p535_p11 = pneg %p534_p10 }
  0x22   : > { %p540_p5 = pnand %p539_p6, %p535_p11 }
  0x24   : > { %543 = shalt.err (!%p540_p5)
}
  0x25   : > { %455 = dma.hbm_to_vmem [thread:$0]  (!%p723_p8), %s135_s8, 128, %s137_s14, %s125_s18  }
  0x26   : > { %145 = sbr.rel (%p678_p3) target bundleno = 214 (0xd6), region = 28  ;;  %s740_s29 = sand.u32 (!%p678_p3), 1, %s621_s10  }
  0x27   : > { %s431_s4 = sshll.u32 (!%p678_p3), %s740_s29, 3  ;;  %s148_s5 = scalar_lea.sflag (!%p678_p3), [#allocation3], %s740_s29 }
  0x28   : > { %s744_s6 = scalar_lea.vmem (!%p678_p3), [#allocation2], %s431_s4 }
  0x2b   : > { %604 = dma.done.wait (%p705_p12), %s148_s5, 128  }
  0x2c   : > { %606 = vsyncadd (%p705_p12), %s148_s5, 4294967168 }
  0x2d   : > { %608 = dma.done.wait (%p40_p1), [#allocation6], 8192  }
  0x2e   : > { %610 = vsyncadd (%p40_p1), [#allocation6], 4294959104  ;;  %v241_v0 = vld [vmem:[#allocation5 + $0x1f0] sm:$0xff]  ;;  %v242_v1 = vld [vmem:[#allocation5 + $0x1f8] sm:$0xff]  ;;  %s433_s17 = sshll.u32 %s740_s29, 5  ;;  %s439_s27 = sshll.u32 %s673_s16, 5 }
  0x2f   : > { %v237_v2 = vld [vmem:[#allocation5 + $0x1d0] sm:$0xff]  ;;  %283 = vmatpush.msra.mxu2 %v241_v0  ;;  %303 = vmatpush.msra.mxu3 %v242_v1  ;;  %v238_v3 = vld [vmem:[#allocation5 + $0x1d8] sm:$0xff]  ;;  %v239_v6 = vld [vmem:[#allocation5 + $0x1e0] sm:$0xff]  ;;  %s339_s13 = scalar_lea.hbm %s791_s2, %s439_s27  ;;  %s177_s14 = scalar_lea.vmem [#allocation7], %s433_s17 }
  0x30   : > { %v233_v4 = vld [vmem:[#allocation5 + $0x1b0] sm:$0xff]  ;;  %v234_v5 = vld [vmem:[#allocation5 + $0x1b8] sm:$0xff]  ;;  %v240_v7 = vld [vmem:[#allocation5 + $0x1e8] sm:$0xff]  ;;  %243 = vmatpush.msra.mxu0 %v239_v6  ;;  %s341_s15 = sshll.u32 %s177_s14, 4  ;;  %s343_s18 = sshll.u32 %s339_s13, 4  ;;  %s342_s15 = int_to_ptr.vmem [resolvable:$true] %s341_s15  ;;  %s344_s18 = int_to_ptr.hbm [resolvable:$true] %s343_s18 }
  0x31   : > { %284 = vmatpush.msra.mxu2 %v237_v2  ;;  %304 = vmatpush.msra.mxu3 %v238_v3  ;;  %v235_v8 = vld [vmem:[#allocation5 + $0x1c0] sm:$0xff]  ;;  %v236_v9 = vld [vmem:[#allocation5 + $0x1c8] sm:$0xff]  ;;  %v229_v10 = vld [vmem:[#allocation5 + $0x190] sm:$0xff]  ;;  %s328_s19 = scalar_lea.sflag [#allocation4], %s740_s29  ;;  %s573_s16 = sshra.s32 %s344_s18, 4  ;;  %s574_s16 = int_to_ptr.hbm [resolvable:$true] %s573_s16 }
  0x32   : > { %263 = vmatpush.msra.mxu1 %v240_v7  ;;  %v230_v11 = vld [vmem:[#allocation5 + $0x198] sm:$0xff]  ;;  %v231_v12 = vld [vmem:[#allocation5 + $0x1a0] sm:$0xff]  ;;  %v232_v13 = vld [vmem:[#allocation5 + $0x1a8] sm:$0xff]  ;;  %244 = vmatpush.msra.mxu0 %v235_v8  ;;  %s575_s20 = scalar_lea.hbm %s574_s16, 32  ;;  %s579_s24 = scalar_lea.hbm %s791_s2, 64 }
  0x33   : > { %285 = vmatpush.msra.mxu2 %v233_v4  ;;  %305 = vmatpush.msra.mxu3 %v234_v5  ;;  %v225_v14 = vld [vmem:[#allocation5 + $0x170] sm:$0xff]  ;;  %v226_v15 = vld [vmem:[#allocation5 + $0x178] sm:$0xff]  ;;  %v227_v16 = vld [vmem:[#allocation5 + $0x180] sm:$0xff]  ;;  %p576_p1 = scmp.ne.s32.totalorder %s574_s16, %s575_s20  ;;  %p580_p12 = scmp.lt.s32.totalorder %s574_s16, %s791_s2 }
  0x34   : > { %264 = vmatpush.msra.mxu1 %v236_v9  ;;  %v228_v17 = vld [vmem:[#allocation5 + $0x188] sm:$0xff]  ;;  %245 = vmatpush.msra.mxu0 %v231_v12  ;;  %v221_v18 = vld [vmem:[#allocation5 + $0x150] sm:$0xff]  ;;  %v222_v19 = vld [vmem:[#allocation5 + $0x158] sm:$0xff]  ;;  %p581_p8 = scmp.lt.s32.totalorder %s579_s24, %s575_s20 }
  0x35   : > { %286 = vmatpush.msra.mxu2 %v229_v10  ;;  %306 = vmatpush.msra.mxu3 %v230_v11  ;;  %v223_v20 = vld [vmem:[#allocation5 + $0x160] sm:$0xff]  ;;  %v224_v21 = vld [vmem:[#allocation5 + $0x168] sm:$0xff]  ;;  %v217_v22 = vld [vmem:[#allocation5 + $0x130] sm:$0xff]  ;;  %p577_p3 = pnand %p576_p1, %p709_p13 }
  0x36   : > { %265 = vmatpush.msra.mxu1 %v232_v13  ;;  %246 = vmatpush.msra.mxu0 %v227_v16  ;;  %v218_v23 = vld [vmem:[#allocation5 + $0x138] sm:$0xff]  ;;  %v219_v24 = vld [vmem:[#allocation5 + $0x140] sm:$0xff]  ;;  %v220_v25 = vld [vmem:[#allocation5 + $0x148] sm:$0xff]  ;;  %p582_p7 = por %p581_p8, %p580_p12 }
  0x37   : > { %287 = vmatpush.msra.mxu2 %v225_v14  ;;  %307 = vmatpush.msra.mxu3 %v226_v15  ;;  %v213_v26 = vld [vmem:[#allocation5 + $0x110] sm:$0xff]  ;;  %v214_v27 = vld [vmem:[#allocation5 + $0x118] sm:$0xff]  ;;  %v215_v28 = vld [vmem:[#allocation5 + $0x120] sm:$0xff]  ;;  %p578_p5 = pneg %p577_p3 }
  0x38   : > { %266 = vmatpush.msra.mxu1 %v228_v17  ;;  %247 = vmatpush.msra.mxu0 %v223_v20  ;;  %v216_v29 = vld [vmem:[#allocation5 + $0x128] sm:$0xff]  ;;  %v209_v30 = vld [vmem:[#allocation5 + $0xf0] sm:$0xff]  ;;  %v210_v31 = vld [vmem:[#allocation5 + $0xf8] sm:$0xff] }
  0x39   : > { %288 = vmatpush.msra.mxu2 %v221_v18  ;;  %308 = vmatpush.msra.mxu3 %v222_v19  ;;  %v211_v32 = vld [vmem:[#allocation5 + $0x100] sm:$0xff]  ;;  %v212_v33 = vld [vmem:[#allocation5 + $0x108] sm:$0xff]  ;;  %v205_v34 = vld [vmem:[#allocation5 + $0xd0] sm:$0xff]  ;;  %p583_p9 = pnand %p582_p7, %p578_p5 }
  0x3a   : > { %267 = vmatpush.msra.mxu1 %v224_v21  ;;  %248 = vmatpush.msra.mxu0 %v219_v24  ;;  %v206_v35 = vld [vmem:[#allocation5 + $0xd8] sm:$0xff]  ;;  %v207_v36 = vld [vmem:[#allocation5 + $0xe0] sm:$0xff]  ;;  %v208_v37 = vld [vmem:[#allocation5 + $0xe8] sm:$0xff] }
  0x3b   : > { %289 = vmatpush.msra.mxu2 %v217_v22  ;;  %309 = vmatpush.msra.mxu3 %v218_v23  ;;  %v201_v38 = vld [vmem:[#allocation5 + $0xb0] sm:$0xff]  ;;  %v202_v39 = vld [vmem:[#allocation5 + $0xb8] sm:$0xff]  ;;  %v203_v40 = vld [vmem:[#allocation5 + $0xc0] sm:$0xff] }
  0x3c   : > { %268 = vmatpush.msra.mxu1 %v220_v25  ;;  %249 = vmatpush.msra.mxu0 %v215_v28  ;;  %v204_v41 = vld [vmem:[#allocation5 + $0xc8] sm:$0xff]  ;;  %v197_v42 = vld [vmem:[#allocation5 + $0x90] sm:$0xff]  ;;  %v198_v43 = vld [vmem:[#allocation5 + $0x98] sm:$0xff] }
  0x3d   : > { %290 = vmatpush.msra.mxu2 %v213_v26  ;;  %310 = vmatpush.msra.mxu3 %v214_v27  ;;  %v199_v44 = vld [vmem:[#allocation5 + $0xa0] sm:$0xff]  ;;  %v200_v45 = vld [vmem:[#allocation5 + $0xa8] sm:$0xff]  ;;  %v193_v46 = vld [vmem:[#allocation5 + $0x70] sm:$0xff] }
  0x3e   : > { %269 = vmatpush.msra.mxu1 %v216_v29  ;;  %250 = vmatpush.msra.mxu0 %v211_v32  ;;  %v194_v47 = vld [vmem:[#allocation5 + $0x78] sm:$0xff]  ;;  %v195_v48 = vld [vmem:[#allocation5 + $0x80] sm:$0xff]  ;;  %v196_v49 = vld [vmem:[#allocation5 + $0x88] sm:$0xff] }
  0x3f   : > { %291 = vmatpush.msra.mxu2 %v209_v30  ;;  %311 = vmatpush.msra.mxu3 %v210_v31  ;;  %v189_v50 = vld [vmem:[#allocation5 + $0x50] sm:$0xff]  ;;  %v190_v51 = vld [vmem:[#allocation5 + $0x58] sm:$0xff]  ;;  %v191_v52 = vld [vmem:[#allocation5 + $0x60] sm:$0xff] }
  0x40   : > { %270 = vmatpush.msra.mxu1 %v212_v33  ;;  %251 = vmatpush.msra.mxu0 %v207_v36  ;;  %v192_v53 = vld [vmem:[#allocation5 + $0x68] sm:$0xff]  ;;  %v185_v54 = vld [vmem:[#allocation5 + $0x30] sm:$0xff]  ;;  %v186_v55 = vld [vmem:[#allocation5 + $0x38] sm:$0xff] }
  0x41   : > { %292 = vmatpush.msra.mxu2 %v205_v34  ;;  %312 = vmatpush.msra.mxu3 %v206_v35  ;;  %v187_v56 = vld [vmem:[#allocation5 + $0x40] sm:$0xff]  ;;  %v188_v57 = vld [vmem:[#allocation5 + $0x48] sm:$0xff]  ;;  %v181_v58 = vld [vmem:[#allocation5 + $0x10] sm:$0xff] }
  0x42   : > { %271 = vmatpush.msra.mxu1 %v208_v37  ;;  %252 = vmatpush.msra.mxu0 %v203_v40  ;;  %v182_v59 = vld [vmem:[#allocation5 + $0x18] sm:$0xff]  ;;  %v183_v61 = vld [vmem:[#allocation5 + $0x20] sm:$0xff]  ;;  %v184_v62 = vld [vmem:[#allocation5 + $0x28] sm:$0xff] }
  0x43   : > { %293 = vmatpush.msra.mxu2 %v201_v38  ;;  %313 = vmatpush.msra.mxu3 %v202_v39  ;;  %v178_v60 = vld [vmem:[%s744_s6] sm:$0xff]  ;;  %v179_v63 = vld [vmem:[#allocation5] sm:$0xff]  ;;  %v180_v0 = vld [vmem:[#allocation5 + $0x8] sm:$0xff] }
  0x44   : > { %272 = vmatpush.msra.mxu1 %v204_v41  ;;  %253 = vmatpush.msra.mxu0 %v199_v44 }
  0x45   : > { %294 = vmatpush.msra.mxu2 %v197_v42  ;;  %314 = vmatpush.msra.mxu3 %v198_v43 }
  0x46   : > { %273 = vmatpush.msra.mxu1 %v200_v45  ;;  %254 = vmatpush.msra.mxu0 %v195_v48 }
  0x47   : > { %295 = vmatpush.msra.mxu2 %v193_v46  ;;  %315 = vmatpush.msra.mxu3 %v194_v47 }
  0x48   : > { %274 = vmatpush.msra.mxu1 %v196_v49  ;;  %255 = vmatpush.msra.mxu0 %v191_v52 }
  0x49   : > { %296 = vmatpush.msra.mxu2 %v189_v50  ;;  %316 = vmatpush.msra.mxu3 %v190_v51 }
  0x4a   : > { %275 = vmatpush.msra.mxu1 %v192_v53  ;;  %256 = vmatpush.msra.mxu0 %v187_v56 }
  0x4b   : > { %297 = vmatpush.msra.mxu2 %v185_v54  ;;  %317 = vmatpush.msra.mxu3 %v186_v55 }
  0x4c   : > { %276 = vmatpush.msra.mxu1 %v188_v57  ;;  %257 = vmatpush.msra.mxu0 %v183_v61 }
  0x4d   : > { %298 = vmatpush.msra.mxu2 %v181_v58  ;;  %318 = vmatpush.msra.mxu3 %v182_v59 }
  0x4e   : > { %299 = vmatmul.f32.vlgmr.msra.gmra.mxu2 %v178_v60  ;;  %319 = vmatmul.f32.vlgmr.msra.gmra.mxu3 %v178_v60 }
  0x4f   : > { %277 = vmatpush.msra.mxu1 %v184_v62  ;;  %258 = vmatpush.msra.mxu0 %v179_v63 }
  0x50   : > { %259 = vmatmul.f32.vlgmr.msra.gmra.mxu0 %v178_v60 }
  0x51   : > { %278 = vmatpush.msra.mxu1 %v180_v0 }
  0x52   : > { %279 = vmatmul.f32.vlgmr.msra.gmra.mxu1 %v178_v60 }
  0xcd   : > { %v260_v1 = vpop.f32.mrf.mxu0 }
  0xce   : > { %323 = vst [vmem:[%s177_s14] sm:$0xff] %v260_v1 }
  0xcf   : > { %v280_v2 = vpop.f32.mrf.mxu1 }
  0xd0   : > { %324 = vst [vmem:[%s177_s14 + $0x8] sm:$0xff] %v280_v2 }
  0xd1   : > { %v300_v3 = vpop.f32.mrf.mxu2  ;;  %v320_v4 = vpop.f32.mrf.mxu3 }
  0xd2   : > { %325 = vst [vmem:[%s177_s14 + $0x10] sm:$0xff] %v300_v3 }
  0xd3   : > { %326 = vst [vmem:[%s177_s14 + $0x18] sm:$0xff] %v320_v4 }
  0xd4   : > { %586 = shalt.err (!%p583_p9)
}
  0xd5   : > { %446 = dma.vmem_to_hbm [thread:$0]  (%p709_p13), %s342_s15, 512, %s344_s18, %s328_s19  }
  0xd6 PF: > { %s355_s29 = sand.u32 1, %s617_s9   ;;  %p797_p10 = scmp.ge.s32.totalorder %s629_s12, 2 }
  0xd7   : > { %s356_s4 = scalar_lea.sflag [#allocation4], %s355_s29 }
  0xd8   : > { %p457_p11 = pnand %p797_p10, %p714_p4 }
  0xda   : > { %p458_p0 = pneg %p457_p11 }
  0xdc   : > { %612 = dma.done.wait (%p458_p0), %s356_s4, 512  }
  0xdd   : > { %614 = vsyncadd (%p458_p0), %s356_s4, 4294966784  ;;  %p16_p2 = scmp.ge.s32.totalorder %s689_s23, 4   ;;  %s798_s9 = smov %s621_s10 }
  0xde   : > { %s799_s10 = smov %s625_s11  ;;  %s800_s11 = smov %s701_s26 }
  0xdf   : > { %s801_s12 = smov %s689_s23  ;;  %18 = sbr.rel (!%p16_p2) target bundleno = 6 (0x6), region = 77 }
  0xe4   :  { %362 = vsyncpa [#allocation3], 1 }
  0xe5   :  { %364 = vsyncpa [#allocation3 + $0x1], 1 }
  0xe6   :  { %365 = vsyncpa [#allocation6], 1 }
  0xe7   :  { %366 = vsyncpa [#allocation4], 1 }
  0xe8   :  { %368 = vsyncpa [#allocation4 + $0x1], 1 }

</bundles_post_ra>
